<compile_context>
chip_gen: v5e
topology: v5e:2x2
jax: 0.10.0
libtpu: 0.0.40
codegen_flags: <defaults>
</compile_context>

<pallas_src>
import functools

import jax
import jax.numpy as jnp
from jax import lax
from jax.experimental import pallas as pl
from jax.experimental.pallas import tpu as pltpu


def _mcc_kernel(yp_ref, yt_ref, out_ref, *, eps, n_rows, tile_rows):
    """One row-tile: per-row (neg_lse + pos_lse), summed to a tile partial."""
    # Widen AFTER the HBM read (inputs stay in native dtype) but BEFORE the
    # eps masking so the 1e12 subtraction cannot overflow narrow dtypes.
    yp = yp_ref[...].astype(jnp.float32)
    yt = yt_ref[...].astype(jnp.float32)

    s = (1.0 - 2.0 * yt) * yp
    neg = s - yt * eps                 # mask out positive-class logits
    pos = s - (1.0 - yt) * eps         # mask out negative-class logits

    def lse_with_zero(x):
        # logsumexp([x, 0]) along the last dim == log(sum(exp(x)) + 1),
        # computed stably (equivalent to concatenating a zero column).
        m = jnp.maximum(jnp.max(x, axis=-1, keepdims=True), 0.0)
        return m + jnp.log(jnp.sum(jnp.exp(x - m), axis=-1, keepdims=True)
                           + jnp.exp(-m))

    loss_rows = lse_with_zero(neg) + lse_with_zero(pos)      # (tile_rows, 1)

    # Mask rows of the (possibly partial) last tile that lie past N.  This is
    # a *static* Python check: when N % TR == 0 no iota/compare/select is ever
    # emitted.  The mask must stay AFTER lse_with_zero so OOB garbage (even
    # NaN/inf) is fully discarded by the select.
    if n_rows % tile_rows != 0:
        i = pl.program_id(0)
        row_ids = (i * tile_rows
                   + lax.broadcasted_iota(jnp.int32, (tile_rows, 1), 0))
        loss_rows = jnp.where(row_ids < n_rows, loss_rows, 0.0)

    partial = jnp.sum(loss_rows)                              # f32 scalar
    # Per-tile partial goes to its own (8,128)-aligned output block; no
    # cross-grid-step carry, so the grid axis can be "parallel".
    out_ref[...] = jnp.broadcast_to(partial, out_ref.shape)


_SUBLANE_ALIGN = {4: 8, 2: 16, 1: 32}   # sublane tile per element size


def _choose_tile_rows(n_rows, n_cols, itemsizes, vmem_budget_bytes):
    """Largest sublane-aligned row tile whose pipeline buffers fit the budget."""
    align = max(_SUBLANE_ALIGN.get(int(sz), 8) for sz in itemsizes)
    if n_rows <= align:
        return n_rows                      # single block covering every row
    # 2 inputs x 2 pipeline buffers, full class dim per block.
    bytes_per_row = 2 * n_cols * sum(int(sz) for sz in itemsizes)
    cap = vmem_budget_bytes // max(bytes_per_row, 1)
    cap = int(min(max(cap, align), 2048, n_rows))
    return max((cap // align) * align, align)


def multilabel_categorical_crossentropy(y_pred, y_true, eps=1e12):
    """Pallas TPU implementation of the PyTorch module's forward pass."""
    assert y_pred.shape == y_true.shape
    C = y_pred.shape[-1]
    # Keep native dtypes (bf16 stays bf16 on the HBM read); no upcast, no pad.
    yp = jnp.asarray(y_pred).reshape(-1, C)
    yt = jnp.asarray(y_true).reshape(-1, C)
    N = yp.shape[0]

    itemsizes = (jnp.dtype(yp.dtype).itemsize, jnp.dtype(yt.dtype).itemsize)
    # 24 MiB input-buffer budget + 32 MiB scoped limit fits v5e/v6e (128 MiB
    # physical) and v7x (64 MiB physical, 32 MiB default scoped).
    TR = _choose_tile_rows(N, C, itemsizes, vmem_budget_bytes=24 * 1024 * 1024)
    n_tiles = pl.cdiv(N, TR)
    # TODO(synk): for very large C, add a class-dim grid axis with an online
    # logsumexp (running max/sum in VMEM scratch) to keep blocks bounded.

    kernel = functools.partial(_mcc_kernel, eps=float(eps),
                               n_rows=N, tile_rows=TR)

    partials = pl.pallas_call(
        kernel,
        out_shape=jax.ShapeDtypeStruct((n_tiles, 8, 128), jnp.float32),
        grid_spec=pltpu.PrefetchScalarGridSpec(
            num_scalar_prefetch=0,
            grid=(n_tiles,),
            in_specs=[
                pl.BlockSpec((TR, C), lambda i: (i, 0)),
                pl.BlockSpec((TR, C), lambda i: (i, 0)),
            ],
            out_specs=pl.BlockSpec((1, 8, 128), lambda i: (i, 0, 0)),
        ),
        compiler_params=pltpu.CompilerParams(
            dimension_semantics=("parallel",),
            vmem_limit_bytes=32 * 1024 * 1024),
    )(yp, yt)

    # Final reduction of per-tile partials + mean in plain JAX (f32).
    return jnp.sum(partials[:, 0, 0]) / jnp.float32(N)


def _reference(y_pred, y_true, eps=1e12):
    y_pred = (1 - 2 * y_true) * y_pred
    y_pred_neg = y_pred - y_true * eps
    y_pred_pos = y_pred - (1 - y_true) * eps
    zeros = jnp.zeros_like(y_pred[..., :1])
    y_pred_neg = jnp.concatenate([y_pred_neg, zeros], axis=-1)
    y_pred_pos = jnp.concatenate([y_pred_pos, zeros], axis=-1)
    neg_loss = jax.nn.logsumexp(y_pred_neg, axis=-1)
    pos_loss = jax.nn.logsumexp(y_pred_pos, axis=-1)
    return (neg_loss + pos_loss).mean()


if __name__ == "__main__":
    key = jax.random.PRNGKey(0)
    k1, k2, k3, k4 = jax.random.split(key, 4)

    # Primary small test: batch=2, seq=8, classes=32 -> (16, 32) rows.
    B, S, C = 2, 8, 32
    y_pred = jax.random.normal(k1, (B, S, C), dtype=jnp.float32) * 3.0
    y_true = (jax.random.uniform(k2, (B, S, C)) > 0.8).astype(jnp.float32)

    loss = multilabel_categorical_crossentropy(y_pred, y_true)
    loss = jax.block_until_ready(loss)
    ref = _reference(y_pred, y_true)
    assert jnp.allclose(loss, ref, rtol=1e-5, atol=1e-5), (loss, ref)

    # Ragged test: N=21 rows (not a multiple of the row tile), C=50
    # -> exercises the partial last tile + in-kernel row mask (no wrapper pad).
    N2, C2 = 21, 50
    y_pred2 = jax.random.normal(k3, (N2, C2), dtype=jnp.float32) * 3.0
    y_true2 = (jax.random.uniform(k4, (N2, C2)) > 0.7).astype(jnp.float32)

    loss2 = multilabel_categorical_crossentropy(y_pred2, y_true2)
    loss2 = jax.block_until_ready(loss2)
    ref2 = _reference(y_pred2, y_true2)
    assert jnp.allclose(loss2, ref2, rtol=1e-5, atol=1e-5), (loss2, ref2)

    print("KERNEL_OK")
</pallas_src>

<mosaic_0001>
module attributes {stable_mosaic.version = 11 : i64} {
  func.func @_mcc_kernel(%arg0: i32, %arg1: memref<16x32xf32, #tpu.memory_space<vmem>>, %arg2: memref<16x32xf32, #tpu.memory_space<vmem>>, %arg3: memref<1x8x128xf32, #tpu.memory_space<vmem>>) attributes {dimension_semantics = [#tpu.dimension_semantics<parallel>], iteration_bounds = array<i64: 1>, scalar_prefetch = 0 : i64, scratch_operands = 0 : i64, tpu.core_type = #tpu.core_type<tc>, window_params = [{transform_indices = @transform_0, window_bounds = array<i64: 16, 32>}, {transform_indices = @transform_1, window_bounds = array<i64: 16, 32>}, {transform_indices = @transform_2, window_bounds = array<i64: 1, 8, 128>}]} {
    %c0 = arith.constant 0 : index
    %c0_0 = arith.constant 0 : index
    %0 = vector.load %arg1[%c0, %c0_0] : memref<16x32xf32, #tpu.memory_space<vmem>>, vector<16x32xf32>
    %c0_1 = arith.constant 0 : index
    %c0_2 = arith.constant 0 : index
    %1 = vector.load %arg2[%c0_1, %c0_2] : memref<16x32xf32, #tpu.memory_space<vmem>>, vector<16x32xf32>
    %cst = arith.constant 2.000000e+00 : f32
    %2 = vector.broadcast %cst : f32 to vector<16x32xf32>
    %3 = arith.mulf %2, %1 : vector<16x32xf32>
    %cst_3 = arith.constant 1.000000e+00 : f32
    %4 = vector.broadcast %cst_3 : f32 to vector<16x32xf32>
    %5 = arith.subf %4, %3 : vector<16x32xf32>
    %6 = arith.mulf %5, %0 : vector<16x32xf32>
    %cst_4 = arith.constant 9.99999995E+11 : f32
    %7 = vector.broadcast %cst_4 : f32 to vector<16x32xf32>
    %8 = arith.mulf %1, %7 : vector<16x32xf32>
    %9 = arith.subf %6, %8 : vector<16x32xf32>
    %cst_5 = arith.constant 1.000000e+00 : f32
    %10 = vector.broadcast %cst_5 : f32 to vector<16x32xf32>
    %11 = arith.subf %10, %1 : vector<16x32xf32>
    %cst_6 = arith.constant 9.99999995E+11 : f32
    %12 = vector.broadcast %cst_6 : f32 to vector<16x32xf32>
    %13 = arith.mulf %11, %12 : vector<16x32xf32>
    %14 = arith.subf %6, %13 : vector<16x32xf32>
    %cst_7 = arith.constant dense<0xFF800000> : vector<16xf32>
    %15 = vector.multi_reduction <maximumf>, %9, %cst_7 [1] : vector<16x32xf32> to vector<16xf32>
    %16 = vector.shape_cast %15 : vector<16xf32> to vector<16x1xf32>
    %cst_8 = arith.constant 0.000000e+00 : f32
    %17 = vector.broadcast %cst_8 : f32 to vector<16x1xf32>
    %18 = arith.maximumf %16, %17 : vector<16x1xf32>
    %19 = vector.broadcast %18 : vector<16x1xf32> to vector<16x32xf32>
    %20 = arith.subf %9, %19 : vector<16x32xf32>
    %21 = math.exp %20 : vector<16x32xf32>
    %cst_9 = arith.constant dense<0.000000e+00> : vector<16xf32>
    %22 = vector.multi_reduction <add>, %21, %cst_9 [1] : vector<16x32xf32> to vector<16xf32>
    %23 = vector.shape_cast %22 : vector<16xf32> to vector<16x1xf32>
    %cst_10 = arith.constant 0.000000e+00 : f32
    %24 = vector.broadcast %cst_10 : f32 to vector<16x1xf32>
    %25 = arith.subf %24, %18 : vector<16x1xf32>
    %26 = math.exp %25 : vector<16x1xf32>
    %27 = arith.addf %23, %26 : vector<16x1xf32>
    %28 = math.log %27 : vector<16x1xf32>
    %29 = arith.addf %18, %28 : vector<16x1xf32>
    %cst_11 = arith.constant dense<0xFF800000> : vector<16xf32>
    %30 = vector.multi_reduction <maximumf>, %14, %cst_11 [1] : vector<16x32xf32> to vector<16xf32>
    %31 = vector.shape_cast %30 : vector<16xf32> to vector<16x1xf32>
    %cst_12 = arith.constant 0.000000e+00 : f32
    %32 = vector.broadcast %cst_12 : f32 to vector<16x1xf32>
    %33 = arith.maximumf %31, %32 : vector<16x1xf32>
    %34 = vector.broadcast %33 : vector<16x1xf32> to vector<16x32xf32>
    %35 = arith.subf %14, %34 : vector<16x32xf32>
    %36 = math.exp %35 : vector<16x32xf32>
    %cst_13 = arith.constant dense<0.000000e+00> : vector<16xf32>
    %37 = vector.multi_reduction <add>, %36, %cst_13 [1] : vector<16x32xf32> to vector<16xf32>
    %38 = vector.shape_cast %37 : vector<16xf32> to vector<16x1xf32>
    %cst_14 = arith.constant 0.000000e+00 : f32
    %39 = vector.broadcast %cst_14 : f32 to vector<16x1xf32>
    %40 = arith.subf %39, %33 : vector<16x1xf32>
    %41 = math.exp %40 : vector<16x1xf32>
    %42 = arith.addf %38, %41 : vector<16x1xf32>
    %43 = math.log %42 : vector<16x1xf32>
    %44 = arith.addf %33, %43 : vector<16x1xf32>
    %45 = arith.addf %29, %44 : vector<16x1xf32>
    %46 = vector.shape_cast %45 : vector<16x1xf32> to vector<1x16x1xf32>
    %cst_15 = arith.constant dense<0.000000e+00> : vector<1xf32>
    %47 = vector.multi_reduction <add>, %46, %cst_15 [1, 2] : vector<1x16x1xf32> to vector<1xf32>
    %48 = vector.shape_cast %47 : vector<1xf32> to vector<1x1x1xf32>
    %49 = vector.extract %48[0, 0, 0] : f32 from vector<1x1x1xf32>
    %50 = vector.broadcast %49 : f32 to vector<1x8x128xf32>
    %c0_16 = arith.constant 0 : index
    %c0_17 = arith.constant 0 : index
    %c0_18 = arith.constant 0 : index
    %51 = vector.load %arg3[%c0_16, %c0_17, %c0_18] : memref<1x8x128xf32, #tpu.memory_space<vmem>>, vector<1x8x128xf32>
    tpu.vector_store %arg3[%c0_16, %c0_17, %c0_18], %50 {strides = array<i32>} : memref<1x8x128xf32, #tpu.memory_space<vmem>>, vector<1x8x128xf32>,
    return
  }
  func.func @transform_0(%arg0: i32) -> (i32, i32) {
    %c0_i32 = arith.constant 0 : i32
    %c0_i32_0 = arith.constant 0 : i32
    return %arg0, %c0_i32 : i32, i32
  }
  func.func @transform_1(%arg0: i32) -> (i32, i32) {
    %c0_i32 = arith.constant 0 : i32
    %c0_i32_0 = arith.constant 0 : i32
    return %arg0, %c0_i32 : i32, i32
  }
  func.func @transform_2(%arg0: i32) -> (i32, i32, i32) {
    %c0_i32 = arith.constant 0 : i32
    %c0_i32_0 = arith.constant 0 : i32
    %c0_i32_1 = arith.constant 0 : i32
    return %arg0, %c0_i32, %c0_i32_0 : i32, i32, i32
  }
}

</mosaic_0001>

<bundles_post_ra>
// kernel: tpu_custom_call.1
= control target key start
LH: loop header
LB: loop body
LE: loop exit
PB: predicated region body
PF: predicated region fallthrough
CT: control target
= control target key end

     0   :  { %7 = vsyncpa [#allocation3], 0  ;;  %s319_s0 = inlined_call_operand.hbm [shape: f32[16,32], index: 0, kind: input, shape index: {}]   ;;  %s320_s1 = inlined_call_operand.hbm [shape: f32[16,32], index: 1, kind: input, shape index: {}]   ;;  %s321_s2 = inlined_call_operand.hbm [shape: f32[1,8,128], index: 2, kind: output, shape index: {}]  }
   0x1   :  { %8 = vsyncpa [#allocation6], 0 }
   0x2   :  { %9 = vsyncpa [#allocation4], 0  ;;  %s14_s11 = sshll.u32 %s319_s0, 4  ;;  %s277_s12 = smov [#allocation2]   ;;  %s15_s11 = int_to_ptr.hbm [resolvable:$true] %s14_s11 }
   0x3   :  { %s16_s13 = sshll.u32 %s277_s12, 4  ;;  %s27_s16 = sshll.u32 %s320_s1, 4  ;;  %s17_s13 = int_to_ptr.vmem [resolvable:$true] %s16_s13  ;;  %s28_s16 = int_to_ptr.hbm [resolvable:$true] %s27_s16 }
   0x4   :  { %s278_s17 = smov 128   ;;  %s279_s18 = smov 8  }
   0x5   :  { %22 = dma.hbm_to_vmem [thread:$0]  %s15_s11, 256, %s17_s13, [#allocation3], %s278_s17, %s278_s17, %s279_s18  }
   0x6   :  { %s280_s19 = smov [#allocation5]  }
   0x7   :  { %s29_s20 = sshll.u32 %s280_s19, 4  ;;  %s30_s20 = int_to_ptr.vmem [resolvable:$true] %s29_s20 }
   0x8   :  { %35 = dma.hbm_to_vmem [thread:$0]  %s28_s16, 256, %s30_s20, [#allocation6], %s278_s17, %s278_s17, %s279_s18  }
   0x9   :  { %271 = dma.done.wait [#allocation3], 256  }
   0xa   :  { %272 = vsyncadd [#allocation3], 4294967040 }
   0xb   :  { %273 = dma.done.wait [#allocation6], 256  }
   0xc   :  { %274 = vsyncadd [#allocation6], 4294967040  ;;  %v46_v0 = vld [vmem:[#allocation5] sm:$0xff]  ;;  %v47_v3 = vld [vmem:[#allocation5 + $0x8] sm:$0xff]  ;;  %vm64_vm0 = vcmask 261120   ;;  %vm135_vm1 = vcmask 7168  }
   0xd   :  { %v48_v1 = vmul.f32 2.0, %v46_v0  ;;  %v58_v2 = vsub.f32 1.0, %v46_v0  ;;  %v44_v4 = vld [vmem:[#allocation2] sm:$0xff]  ;;  %v49_v5 = vmul.f32 2.0, %v47_v3  ;;  %v54_v8 = vmul.f32 1e+12, %v46_v0 }
   0xe   :  { %v59_v9 = vsub.f32 1.0, %v47_v3  ;;  %v45_v10 = vld [vmem:[#allocation2 + $0x8] sm:$0xff]  ;;  %v55_v13 = vmul.f32 1e+12, %v47_v3  ;;  %s281_s0 = smov [#allocation7]   ;;  %s157_s23 = sshll.u32 %s321_s2, 4  ;;  %s158_s23 = int_to_ptr.hbm [resolvable:$true] %s157_s23 }
   0xf   :  { %v50_v6 = vsub.f32 1.0, %v48_v1  ;;  %v60_v7 = vmul.f32 1e+12, %v58_v2  ;;  %v51_v11 = vsub.f32 1.0, %v49_v5  ;;  %s155_s1 = sshll.u32 %s281_s0, 4  ;;  %s156_s1 = int_to_ptr.vmem [resolvable:$true] %s155_s1 }
  0x10   :  { %v61_v17 = vmul.f32 1e+12, %v59_v9 }
  0x11   :  { %v52_v12 = vmul.f32 %v50_v6, %v44_v4  ;;  %v53_v16 = vmul.f32 %v51_v11, %v45_v10 }
  0x13   :  { %v62_v14 = vsub.f32 %v52_v12, %v60_v7  ;;  %v56_v15 = vsub.f32 %v52_v12, %v54_v8  ;;  %v63_v20 = vsub.f32 %v53_v16, %v61_v17  ;;  %v57_v21 = vsub.f32 %v53_v16, %v55_v13 }
  0x15   :  { %v99_v18 = vsel %vm64_vm0, %v62_v14, -inf  ;;  %v65_v19 = vsel %vm64_vm0, %v56_v15, -inf  ;;  %v102_v22 = vsel %vm64_vm0, %v63_v20, -inf  ;;  %v68_v23 = vsel %vm64_vm0, %v57_v21, -inf }
  0x16   :  { %100 = vmax.xlane.f32.xlu1 %v99_v18  ;;  %66 = vmax.xlane.f32.xlu0 %v65_v19 }
  0x1e   :  { %103 = vmax.xlane.f32.xlu1 %v102_v22  ;;  %69 = vmax.xlane.f32.xlu0 %v68_v23 }
  0x89   :  { %v101_v24 = vpop.xlane.xlu1 %100  ;;  %v67_v25 = vpop.xlane.xlu0 %66 }
  0x8a   :  { %v307_v26 = vmax.f32 %v101_v24, 0.0  ;;  %v71_v27 = vmax.f32 %v67_v25, 0.0 }
  0x8c   :  { %v107_v28 = vsub.f32 %v62_v14, %v307_v26  ;;  %v73_v29 = vsub.f32 %v56_v15, %v71_v27  ;;  %v119_v48 = vsub.f32 0.0, %v307_v26  ;;  %v85_v49 = vsub.f32 0.0, %v71_v27 }
  0x8e   :  { %v109_v30 = vmul.f32 1.442695, %v107_v28  ;;  %v75_v31 = vmul.f32 1.442695, %v73_v29  ;;  %v121_v50 = vmul.f32 1.442695, %v119_v48 }
  0x8f   :  { %v87_v51 = vmul.f32 1.442695, %v85_v49 }
  0x90   :  { %175 = vpow2.f32 %v109_v30 }
  0x91   :  { %v104_v32 = vpop.xlane.xlu1 %103  ;;  %v70_v33 = vpop.xlane.xlu0 %69  ;;  %177 = vpow2.f32 %v75_v31 }
  0x92   :  { %v106_v34 = vmax.f32 %v104_v32, 0.0  ;;  %v72_v35 = vmax.f32 %v70_v33, 0.0 }
  0x94   :  { %v108_v36 = vsub.f32 %v63_v20, %v106_v34  ;;  %v74_v37 = vsub.f32 %v57_v21, %v72_v35  ;;  %v120_v52 = vsub.f32 0.0, %v106_v34  ;;  %v86_v53 = vsub.f32 0.0, %v72_v35 }
  0x96   :  { %v176_v38 = vpop.eup %175  ;;  %v111_v39 = vmul.f32 1.442695, %v108_v36  ;;  %v77_v40 = vmul.f32 1.442695, %v74_v37  ;;  %v123_v54 = vmul.f32 1.442695, %v120_v52 }
  0x97   :  { %v113_v41 = vsel %vm64_vm0, %v176_v38, 0.0  ;;  %v178_v42 = vpop.eup %177  ;;  %v89_v55 = vmul.f32 1.442695, %v86_v53 }
  0x98   :  { %179 = vpow2.f32 %v111_v39  ;;  %114 = vadd.xlane.f32.xlu0 %v113_v41  ;;  %v79_v43 = vsel %vm64_vm0, %v178_v42, 0.0 }
  0x99   :  { %181 = vpow2.f32 %v77_v40  ;;  %80 = vadd.xlane.f32.xlu2 %v79_v43 }
  0x9a   :  { %183 = vpow2.f32 %v121_v50 }
  0x9b   :  { %185 = vpow2.f32 %v87_v51 }
  0x9c   :  { %187 = vpow2.f32 %v123_v54 }
  0x9d   :  { %189 = vpow2.f32 %v89_v55 }
  0x9e   :  { %v180_v44 = vpop.eup %179 }
  0x9f   :  { %v116_v45 = vsel %vm64_vm0, %v180_v44, 0.0  ;;  %v182_v46 = vpop.eup %181 }
  0xa0   :  { %117 = vadd.xlane.f32.xlu1 %v116_v45  ;;  %v82_v47 = vsel %vm64_vm0, %v182_v46, 0.0  ;;  %v184_v56 = vpop.eup %183 }
  0xa1   :  { %83 = vadd.xlane.f32.xlu2 %v82_v47  ;;  %v186_v59 = vpop.eup %185 }
  0xa2   :  { %v188_v62 = vpop.eup %187 }
  0xa3   :  { %v190_v0 = vpop.eup %189 }
 0x10b   :  { %v115_v57 = vpop.xlane.xlu0 %114 }
 0x10c   :  { %v125_v58 = vadd.f32 %v184_v56, %v115_v57  ;;  %v81_v60 = vpop.xlane.xlu2 %80 }
 0x10d   :  { %v91_v61 = vadd.f32 %v186_v59, %v81_v60 }
 0x10e   :  { %191 = vlog2.f32 %v125_v58 }
 0x10f   :  { %193 = vlog2.f32 %v91_v61 }
 0x113   :  { %v118_v63 = vpop.xlane.xlu1 %117 }
 0x114   :  { %v126_v1 = vadd.f32 %v188_v62, %v118_v63  ;;  %v192_v2 = vpop.eup %191  ;;  %v84_v3 = vpop.xlane.xlu2 %83 }
 0x115   :  { %v194_v4 = vpop.eup %193  ;;  %v92_v5 = vadd.f32 %v190_v0, %v84_v3  ;;  %v128_v7 = vmul.f32 0.6931472, %v192_v2 }
 0x116   :  { %195 = vlog2.f32 %v126_v1  ;;  %v94_v6 = vmul.f32 0.6931472, %v194_v4 }
 0x117   :  { %197 = vlog2.f32 %v92_v5  ;;  %v131_v10 = vadd.f32 %v128_v7, %v307_v26 }
 0x118   :  { %v97_v9 = vadd.f32 %v94_v6, %v71_v27 }
 0x11a   :  { %v133_v16 = vadd.f32 %v131_v10, %v97_v9 }
 0x11c   :  { %v196_v8 = vpop.eup %195  ;;  %v136_v18 = vsel %vm135_vm1, %v133_v16, 0.0 }
 0x11d   :  { %v130_v11 = vmul.f32 0.6931472, %v196_v8  ;;  %v198_v12 = vpop.eup %197 }
 0x11e   :  { %v96_v14 = vmul.f32 0.6931472, %v198_v12 }
 0x11f   :  { %v132_v13 = vadd.f32 %v130_v11, %v106_v34 }
 0x120   :  { %v98_v15 = vadd.f32 %v96_v14, %v72_v35 }
 0x122   :  { %v134_v17 = vadd.f32 %v132_v13, %v98_v15 }
 0x124   :  { %v137_v19 = vsel %vm135_vm1, %v134_v17, 0.0 }
 0x125   :  { %v138_v20 = vadd.f32 %v137_v19, %v136_v18 }
 0x127   :  { %139 = vadd.xlane.f32.xlu2 %v138_v20 }
 0x19a   :  { %v140_v21 = vpop.xlane.xlu2 %139 }
 0x19b   :  { %v141_v22 = vrot.slane %v140_v21, 4 }
 0x19d   :  { %v142_v23 = vadd.f32 %v141_v22, %v140_v21 }
 0x19f   :  { %v143_v24 = vrot.slane %v142_v23, 2 }
 0x1a1   :  { %v144_v25 = vadd.f32 %v143_v24, %v142_v23 }
 0x1a3   :  { %v145_v27 = vrot.slane %v144_v25, 1 }
 0x1a5   :  { %v146_v28 = vadd.f32 %v145_v27, %v144_v25 }
 0x1a7   :  { %168 = vpush %v146_v28 }
 0x1d8   :  { %s169_s24 = spop %168 }
 0x1d9   :  { %v148_v26 = vstv %s169_s24 }
 0x1da   :  { %149 = vst [vmem:[#allocation7] sm:$0xff] %v148_v26 }
 0x1db   :  { %160 = dma.vmem_to_hbm [thread:$0]  %s156_s1, 128, %s158_s23, [#allocation4]  }
 0x1dc   :  { %275 = dma.done.wait [#allocation4], 128  }
 0x1dd   :  { %276 = vsyncadd [#allocation4], 4294967168 }
 0x1de   :  { %165 = vsyncpa [#allocation3], 1 }
 0x1df   :  { %166 = vsyncpa [#allocation6], 1 }
 0x1e0   :  { %167 = vsyncpa [#allocation4], 1 }

</bundles_post_ra>
